<compile_context>
chip_gen: v5e
topology: v5e:2x2
jax: 0.10.0
libtpu: 0.0.40
codegen_flags: <defaults>
</compile_context>

<pallas_src>
import functools

import jax
import jax.numpy as jnp
from jax.experimental import pallas as pl
from jax.experimental.pallas import tpu as pltpu

_OUT_PAD = 128            # lane-dense output slab width
_MAX_TILE_B = 512         # batch tile for large batches


def _round_up(x, m):
    return ((x + m - 1) // m) * m


# ---------------------------------------------------------------------------
# Kernel
# ---------------------------------------------------------------------------
def _make_critic_kernel(obs_dim, act_dim, hidden, pad_obs, pad_act):
    """Builds the fused twin-head critic kernel for the given static dims."""
    h2 = 2 * hidden
    r_b1 = pad_obs + pad_act          # bias-1 row (segment padded to 8 rows)
    r_w2 = r_b1 + 8                   # block-diagonal W2 start (multiple of 8)
    r_b2 = r_w2 + h2                  # bias-2 row

    def kernel(state_ref, action_ref, p12_ref, p3_ref, out_ref):
        s = state_ref[...]            # [TB, obs]
        a = action_ref[...]           # [TB, act]

        # Static sub-rectangle views of the packed parameter blobs (VMEM loads).
        w1s = p12_ref[0:obs_dim, :]                    # [obs, 2H]
        w1a = p12_ref[pad_obs:pad_obs + act_dim, :]    # [act, 2H]
        b1 = p12_ref[r_b1:r_b1 + 1, :]                 # [1, 2H]
        w2 = p12_ref[r_w2:r_w2 + h2, :]                # [2H, 2H] block-diagonal
        b2 = p12_ref[r_b2:r_b2 + 1, :]                 # [1, 2H]
        w3 = p3_ref[0:h2, :]                           # [2H, 128] (cols 0,1 used)
        b3 = p3_ref[h2:h2 + 1, :]                      # [1, 128]

        # Layer 1 (split over state/action -> no host-side concat), both heads at once.
        h = (jnp.dot(s, w1s, preferred_element_type=jnp.float32)
             + jnp.dot(a, w1a, preferred_element_type=jnp.float32)
             + b1)
        h = jnp.maximum(h, 0.0)
        # Layer 2: one block-diagonal dot keeps the heads independent.
        h = jnp.dot(h, w2, preferred_element_type=jnp.float32) + b2
        h = jnp.maximum(h, 0.0)
        # Layer 3: one dot into a lane-dense 128-wide slab (cols 0/1 = q1/q2).
        out_ref[...] = jnp.dot(h, w3, preferred_element_type=jnp.float32) + b3

    return kernel


# ---------------------------------------------------------------------------
# Parameter packing (do this ONCE, outside the training/inference hot path)
# ---------------------------------------------------------------------------
def pack_critic_params(params, obs_dim, act_dim, hidden):
    """Packs the 12 per-head tensors into 2 contiguous f32 blobs.

    p12: [pad(obs)+pad(act)+8+2H+8, 2H]  -- W1_state | W1_action | b1 | W2(blockdiag) | b2
    p3 : [2H+8, 128]                     -- W3 (col0=q1, col1=q2) | b3
    Off-(block)diagonal entries are exact zeros, so head independence is preserved.
    """
    h2 = 2 * hidden
    pad_obs = _round_up(obs_dim, 8)
    pad_act = _round_up(act_dim, 8)
    rows12 = pad_obs + pad_act + 8 + h2 + 8

    q1, q2 = params["q1"], params["q2"]

    p12 = jnp.zeros((rows12, h2), jnp.float32)
    w1 = jnp.concatenate([q1["w1"], q2["w1"]], axis=1)          # [obs+act, 2H]
    p12 = p12.at[0:obs_dim, :].set(w1[:obs_dim])
    p12 = p12.at[pad_obs:pad_obs + act_dim, :].set(w1[obs_dim:])
    r_b1 = pad_obs + pad_act
    p12 = p12.at[r_b1:r_b1 + 1, :].set(
        jnp.concatenate([q1["b1"], q2["b1"]], axis=1))
    r_w2 = r_b1 + 8
    p12 = p12.at[r_w2:r_w2 + hidden, 0:hidden].set(q1["w2"])
    p12 = p12.at[r_w2 + hidden:r_w2 + h2, hidden:h2].set(q2["w2"])
    r_b2 = r_w2 + h2
    p12 = p12.at[r_b2:r_b2 + 1, :].set(
        jnp.concatenate([q1["b2"], q2["b2"]], axis=1))

    p3 = jnp.zeros((h2 + 8, _OUT_PAD), jnp.float32)
    p3 = p3.at[0:hidden, 0:1].set(q1["w3"])
    p3 = p3.at[hidden:h2, 1:2].set(q2["w3"])
    p3 = p3.at[h2:h2 + 1, 0:1].set(q1["b3"])
    p3 = p3.at[h2:h2 + 1, 1:2].set(q2["b3"])
    return p12, p3


# ---------------------------------------------------------------------------
# Forward wrapper
# ---------------------------------------------------------------------------
def critic_forward(state, action, packed_params):
    """Pallas-backed forward of CriticNetwork.

    state:  [B, obs_dim] float32
    action: [B, act_dim] float32
    packed_params: (p12, p3) from pack_critic_params
    returns (q1, q2), each [B, 1] float32
    """
    p12, p3 = packed_params
    state = state.astype(jnp.float32)
    action = action.astype(jnp.float32)

    B, obs_dim = state.shape
    act_dim = action.shape[1]
    h2 = p12.shape[1]
    hidden = h2 // 2
    pad_obs = _round_up(obs_dim, 8)
    pad_act = _round_up(act_dim, 8)
    out_pad = p3.shape[1]

    # Batch tile: full batch when small, 512 rows when large (weights ~tens of KB
    # stay resident -> VMEM never binds on v5e/v6e/v7x).
    tile_b = B if B <= _MAX_TILE_B else _MAX_TILE_B
    grid = (pl.cdiv(B, tile_b),)

    kernel = _make_critic_kernel(obs_dim, act_dim, hidden, pad_obs, pad_act)

    out = pl.pallas_call(
        kernel,
        out_shape=jax.ShapeDtypeStruct((B, out_pad), jnp.float32),
        grid=grid,
        in_specs=[
            pl.BlockSpec((tile_b, obs_dim), lambda i: (i, 0)),
            pl.BlockSpec((tile_b, act_dim), lambda i: (i, 0)),
            pl.BlockSpec(p12.shape, lambda i: (0, 0)),   # resident weights
            pl.BlockSpec(p3.shape, lambda i: (0, 0)),    # resident weights
        ],
        out_specs=pl.BlockSpec((tile_b, out_pad), lambda i: (i, 0)),
        compiler_params=pltpu.CompilerParams(
            dimension_semantics=("parallel",)),
    )(state, action, p12, p3)

    # q1 / q2 live in lanes 0 and 1 of the lane-dense output slab.
    return out[:, 0:1], out[:, 1:2]


# ---------------------------------------------------------------------------
# Init + plain-JAX reference (torch.nn.Linear-style init, weights stored [in, out])
# ---------------------------------------------------------------------------
def init_critic_params(key, obs_dim, act_dim, hidden_size):
    in_dim = obs_dim + act_dim

    def linear(k, fan_in, fan_out):
        kw, kb = jax.random.split(k)
        bound = 1.0 / jnp.sqrt(jnp.float32(fan_in))
        w = jax.random.uniform(kw, (fan_in, fan_out), jnp.float32, -bound, bound)
        b = jax.random.uniform(kb, (1, fan_out), jnp.float32, -bound, bound)
        return w, b

    keys = jax.random.split(key, 6)
    params = {}
    for head, ks in (("q1", keys[:3]), ("q2", keys[3:])):
        w1, b1 = linear(ks[0], in_dim, hidden_size)
        w2, b2 = linear(ks[1], hidden_size, hidden_size)
        w3, b3 = linear(ks[2], hidden_size, 1)
        params[head] = {"w1": w1, "b1": b1, "w2": w2, "b2": b2, "w3": w3, "b3": b3}
    return params


def critic_forward_ref(state, action, params):
    x = jnp.concatenate([state, action], axis=1).astype(jnp.float32)

    def mlp(p):
        h = jnp.maximum(x @ p["w1"] + p["b1"], 0.0)
        h = jnp.maximum(h @ p["w2"] + p["b2"], 0.0)
        return h @ p["w3"] + p["b3"]

    return mlp(params["q1"]), mlp(params["q2"])


if __name__ == "__main__":
    # Small shapes consistent with the module's forward (state/action vectors).
    batch = 8
    obs_dim = 24
    act_dim = 8
    hidden_size = 32

    key = jax.random.PRNGKey(0)
    k_params, k_state, k_action = jax.random.split(key, 3)

    params = init_critic_params(k_params, obs_dim, act_dim, hidden_size)
    packed = pack_critic_params(params, obs_dim, act_dim, hidden_size)
    packed = jax.tree_util.tree_map(jax.block_until_ready, packed)  # pack once

    state = jax.random.normal(k_state, (batch, obs_dim), jnp.float32)
    action = jax.random.normal(k_action, (batch, act_dim), jnp.float32)

    q1, q2 = critic_forward(state, action, packed)
    q1 = jax.block_until_ready(q1)
    q2 = jax.block_until_ready(q2)

    # Sanity check against plain-JAX reference.
    r1, r2 = critic_forward_ref(state, action, params)
    assert q1.shape == (batch, 1) and q2.shape == (batch, 1)
    assert jnp.allclose(q1, r1, atol=1e-4, rtol=1e-4)
    assert jnp.allclose(q2, r2, atol=1e-4, rtol=1e-4)

    print("KERNEL_OK")
</pallas_src>

<mosaic_0001>
module attributes {stable_mosaic.version = 11 : i64} {
  func.func @kernel(%arg0: i32, %arg1: memref<8x24xf32, #tpu.memory_space<vmem>>, %arg2: memref<8x8xf32, #tpu.memory_space<vmem>>, %arg3: memref<112x64xf32, #tpu.memory_space<vmem>>, %arg4: memref<72x128xf32, #tpu.memory_space<vmem>>, %arg5: memref<8x128xf32, #tpu.memory_space<vmem>>) attributes {dimension_semantics = [#tpu.dimension_semantics<parallel>], iteration_bounds = array<i64: 1>, scalar_prefetch = 0 : i64, scratch_operands = 0 : i64, tpu.core_type = #tpu.core_type<tc>, window_params = [{transform_indices = @transform_0, window_bounds = array<i64: 8, 24>}, {transform_indices = @transform_1, window_bounds = array<i64: 8, 8>}, {pipeline_mode = #tpu.pipeline_mode<synchronous>, transform_indices = @transform_2, window_bounds = array<i64: 112, 64>}, {pipeline_mode = #tpu.pipeline_mode<synchronous>, transform_indices = @transform_3, window_bounds = array<i64: 72, 128>}, {transform_indices = @transform_4, window_bounds = array<i64: 8, 128>}]} {
    %c0 = arith.constant 0 : index
    %c0_0 = arith.constant 0 : index
    %0 = vector.load %arg1[%c0, %c0_0] : memref<8x24xf32, #tpu.memory_space<vmem>>, vector<8x24xf32>
    %c0_1 = arith.constant 0 : index
    %c0_2 = arith.constant 0 : index
    %1 = vector.load %arg2[%c0_1, %c0_2] : memref<8x8xf32, #tpu.memory_space<vmem>>, vector<8x8xf32>
    %c0_3 = arith.constant 0 : index
    %c0_4 = arith.constant 0 : index
    %2 = vector.load %arg3[%c0_3, %c0_4] : memref<112x64xf32, #tpu.memory_space<vmem>>, vector<24x64xf32>
    %c24 = arith.constant 24 : index
    %c0_5 = arith.constant 0 : index
    %3 = vector.load %arg3[%c24, %c0_5] : memref<112x64xf32, #tpu.memory_space<vmem>>, vector<8x64xf32>
    %c32 = arith.constant 32 : index
    %c0_6 = arith.constant 0 : index
    %4 = vector.load %arg3[%c32, %c0_6] : memref<112x64xf32, #tpu.memory_space<vmem>>, vector<1x64xf32>
    %c40 = arith.constant 40 : index
    %c0_7 = arith.constant 0 : index
    %5 = vector.load %arg3[%c40, %c0_7] : memref<112x64xf32, #tpu.memory_space<vmem>>, vector<64x64xf32>
    %c104 = arith.constant 104 : index
    %c0_8 = arith.constant 0 : index
    %6 = vector.load %arg3[%c104, %c0_8] : memref<112x64xf32, #tpu.memory_space<vmem>>, vector<1x64xf32>
    %c0_9 = arith.constant 0 : index
    %c0_10 = arith.constant 0 : index
    %7 = vector.load %arg4[%c0_9, %c0_10] : memref<72x128xf32, #tpu.memory_space<vmem>>, vector<64x128xf32>
    %c64 = arith.constant 64 : index
    %c0_11 = arith.constant 0 : index
    %8 = vector.load %arg4[%c64, %c0_11] : memref<72x128xf32, #tpu.memory_space<vmem>>, vector<1x128xf32>
    %cst = arith.constant dense<0.000000e+00> : vector<8x64xf32>
    %9 = tpu.matmul %0, %2, %cst {dimension_numbers = #tpu.dot_dimension_numbers<[1], [0], [0], [1], [0, 0, 1, 1], [], []>} : vector<8x24xf32>, vector<24x64xf32>, vector<8x64xf32> -> vector<8x64xf32>
    %cst_12 = arith.constant dense<0.000000e+00> : vector<8x64xf32>
    %10 = tpu.matmul %1, %3, %cst_12 {dimension_numbers = #tpu.dot_dimension_numbers<[1], [0], [0], [1], [0, 0, 1, 1], [], []>} : vector<8x8xf32>, vector<8x64xf32>, vector<8x64xf32> -> vector<8x64xf32>
    %11 = arith.addf %9, %10 : vector<8x64xf32>
    %12 = vector.broadcast %4 : vector<1x64xf32> to vector<8x64xf32>
    %13 = arith.addf %11, %12 : vector<8x64xf32>
    %cst_13 = arith.constant 0.000000e+00 : f32
    %14 = vector.broadcast %cst_13 : f32 to vector<8x64xf32>
    %15 = arith.maximumf %13, %14 : vector<8x64xf32>
    %cst_14 = arith.constant dense<0.000000e+00> : vector<8x64xf32>
    %16 = tpu.matmul %15, %5, %cst_14 {dimension_numbers = #tpu.dot_dimension_numbers<[1], [0], [0], [1], [0, 0, 1, 1], [], []>} : vector<8x64xf32>, vector<64x64xf32>, vector<8x64xf32> -> vector<8x64xf32>
    %17 = vector.broadcast %6 : vector<1x64xf32> to vector<8x64xf32>
    %18 = arith.addf %16, %17 : vector<8x64xf32>
    %cst_15 = arith.constant 0.000000e+00 : f32
    %19 = vector.broadcast %cst_15 : f32 to vector<8x64xf32>
    %20 = arith.maximumf %18, %19 : vector<8x64xf32>
    %cst_16 = arith.constant dense<0.000000e+00> : vector<8x128xf32>
    %21 = tpu.matmul %20, %7, %cst_16 {dimension_numbers = #tpu.dot_dimension_numbers<[1], [0], [0], [1], [0, 0, 1, 1], [], []>} : vector<8x64xf32>, vector<64x128xf32>, vector<8x128xf32> -> vector<8x128xf32>
    %22 = vector.broadcast %8 : vector<1x128xf32> to vector<8x128xf32>
    %23 = arith.addf %21, %22 : vector<8x128xf32>
    %c0_17 = arith.constant 0 : index
    %c0_18 = arith.constant 0 : index
    %24 = vector.load %arg5[%c0_17, %c0_18] : memref<8x128xf32, #tpu.memory_space<vmem>>, vector<8x128xf32>
    tpu.vector_store %arg5[%c0_17, %c0_18], %23 {strides = array<i32>} : memref<8x128xf32, #tpu.memory_space<vmem>>, vector<8x128xf32>,
    return
  }
  func.func @transform_0(%arg0: i32) -> (i32, i32) {
    %c0_i32 = arith.constant 0 : i32
    %c0_i32_0 = arith.constant 0 : i32
    return %arg0, %c0_i32 : i32, i32
  }
  func.func @transform_1(%arg0: i32) -> (i32, i32) {
    %c0_i32 = arith.constant 0 : i32
    %c0_i32_0 = arith.constant 0 : i32
    return %arg0, %c0_i32 : i32, i32
  }
  func.func @transform_2(%arg0: i32) -> (i32, i32) {
    %c0_i32 = arith.constant 0 : i32
    %c0_i32_0 = arith.constant 0 : i32
    %c0_i32_1 = arith.constant 0 : i32
    return %c0_i32, %c0_i32_0 : i32, i32
  }
  func.func @transform_3(%arg0: i32) -> (i32, i32) {
    %c0_i32 = arith.constant 0 : i32
    %c0_i32_0 = arith.constant 0 : i32
    %c0_i32_1 = arith.constant 0 : i32
    return %c0_i32, %c0_i32_0 : i32, i32
  }
  func.func @transform_4(%arg0: i32) -> (i32, i32) {
    %c0_i32 = arith.constant 0 : i32
    %c0_i32_0 = arith.constant 0 : i32
    return %arg0, %c0_i32 : i32, i32
  }
}

</mosaic_0001>

<bundles_post_ra>
// kernel: tpu_custom_call.1
= control target key start
LH: loop header
LB: loop body
LE: loop exit
PB: predicated region body
PF: predicated region fallthrough
CT: control target
= control target key end

     0   :  { %vm43_vm0 = vcmask 64512   ;;  %vm67_vm1 = vcmask 195584   ;;  %s299_s0 = inlined_call_operand.vmem [shape: f32[8,24], index: 0, kind: input, shape index: {}]   ;;  %s300_s1 = inlined_call_operand.vmem [shape: f32[8,8], index: 1, kind: input, shape index: {}]   ;;  %s301_s2 = inlined_call_operand.vmem [shape: f32[112,64], index: 2, kind: input, shape index: {}]   ;;  %s302_s3 = inlined_call_operand.vmem [shape: f32[72,128], index: 3, kind: input, shape index: {}]   ;;  %s303_s4 = inlined_call_operand.hbm [shape: f32[8,128], index: 4, kind: output, shape index: {}]  }
   0x1   :  { %v22_v0 = vld [vmem:[%s301_s2 + $0x10] sm:$0xff]  ;;  %v21_v1 = vld [vmem:[%s301_s2 + $0x8] sm:$0xff]  ;;  %v23_v2 = vld [vmem:[%s301_s2 + $0x18] sm:$0xff] }
   0x2   :  { %84 = vmatpush.msra.mxu1 %v22_v0  ;;  %62 = vmatpush.msra.mxu0 %v23_v2  ;;  %v19_v3 = vld [vmem:[%s300_s1] sm:$0xff]  ;;  %v31_v6 = vld [vmem:[%s301_s2 + $0x58] sm:$0xff]  ;;  %v30_v8 = vld [vmem:[%s301_s2 + $0x50] sm:$0xff] }
   0x3   :  { %v20_v4 = vld [vmem:[%s301_s2] sm:$0xff]  ;;  %161 = vmatmul.msk.f32.vlgmr.msra.gmra.mxu0 %vm43_vm0, %v19_v3 }
   0x4   :  { %v32_v5 = vld [vmem:[%s301_s2 + $0x60] sm:$0xff]  ;;  %85 = vmatpush.msra.mxu1 %v21_v1 }
   0x5   :  { %v18_v7 = vld [vmem:[%s299_s0] sm:$0xff]  ;;  %107 = vmatpush.msra.mxu2 %v32_v5 }
   0x6   :  { %9 = vsyncpa [#allocation3], 0  ;;  %86 = vmatpush.msra.mxu1 %v20_v4  ;;  %v29_v9 = vld [vmem:[%s301_s2 + $0x48] sm:$0xff]  ;;  %v28_v10 = vld [vmem:[%s301_s2 + $0x40] sm:$0xff]  ;;  %vm95_vm2 = vcmask 523264   ;;  %s195_s0 = smov [#allocation2]  }
   0x7   :  { %108 = vmatpush.msra.mxu2 %v31_v6  ;;  %162 = vmatmul.msk.f32.vlgmr.msra.gmra.mxu1 %vm67_vm1, %v18_v7  ;;  %v27_v11 = vld [vmem:[%s301_s2 + $0x38] sm:$0xff]  ;;  %v26_v12 = vld [vmem:[%s301_s2 + $0x30] sm:$0xff]  ;;  %v25_v13 = vld [vmem:[%s301_s2 + $0x28] sm:$0xff]  ;;  %s150_s10 = sshll.u32 %s195_s0, 4  ;;  %s152_s13 = sshll.u32 %s303_s4, 4  ;;  %s151_s10 = int_to_ptr.vmem [resolvable:$true] %s150_s10  ;;  %s153_s13 = int_to_ptr.hbm [resolvable:$true] %s152_s13 }
   0x8   :  { %v41_v14 = vld [vmem:[%s302_s3 + $0x38] sm:$0xff]  ;;  %v40_v15 = vld [vmem:[%s302_s3 + $0x30] sm:$0xff]  ;;  %v39_v16 = vld [vmem:[%s302_s3 + $0x28] sm:$0xff] }
   0x9   :  { %109 = vmatpush.msra.mxu2 %v30_v8  ;;  %132 = vmatpush.msra.mxu3 %v41_v14  ;;  %v38_v17 = vld [vmem:[%s302_s3 + $0x20] sm:$0xff]  ;;  %v37_v18 = vld [vmem:[%s302_s3 + $0x18] sm:$0xff]  ;;  %v36_v25 = vld [vmem:[%s302_s3 + $0x10] sm:$0xff] }
   0xa   :  { %v166_v20 = vld [vmem:[%s301_s2 + $0x20] ss:$0 sm:$0xff]  ;;  %v35_v26 = vld [vmem:[%s302_s3 + $0x8] sm:$0xff] }
   0xb   :  { %110 = vmatpush.msra.mxu2 %v29_v9  ;;  %133 = vmatpush.msra.mxu3 %v40_v15  ;;  %v34_v27 = vld [vmem:[%s302_s3] sm:$0xff]  ;;  %v167_v28 = vld [vmem:[%s301_s2 + $0x68] ss:$0 sm:$0xff] }
   0xc   :  { %v168_v32 = vld [vmem:[%s302_s3 + $0x40] ss:$0 sm:$0xff] }
   0xd   :  { %111 = vmatpush.msra.mxu2 %v28_v10  ;;  %134 = vmatpush.msra.mxu3 %v39_v16 }
   0xf   :  { %112 = vmatpush.msra.mxu2 %v27_v11  ;;  %135 = vmatpush.msra.mxu3 %v38_v17 }
  0x11   :  { %113 = vmatpush.msra.mxu2 %v26_v12  ;;  %136 = vmatpush.msra.mxu3 %v37_v18 }
  0x13   :  { %114 = vmatpush.msra.mxu2 %v25_v13  ;;  %137 = vmatpush.msra.mxu3 %v36_v25 }
  0x15   :  { %138 = vmatpush.msra.mxu3 %v35_v26 }
  0x17   :  { %139 = vmatpush.msra.mxu3 %v34_v27 }
  0x80   :  { %v64_v19 = vpop.f32.mrf.mxu0 }
  0x84   :  { %v88_v21 = vpop.f32.mrf.mxu1 }
  0x85   :  { %v89_v22 = vadd.f32 %v88_v21, %v64_v19 }
  0x87   :  { %v92_v23 = vadd.f32 %v166_v20, %v89_v22 }
  0x89   :  { %v93_v24 = vmax.f32 %v92_v23, 0.0 }
  0x8b   :  { %163 = vmatmul.msk.f32.vlgmr.msra.gmra.mxu2 %vm95_vm2, %v93_v24 }
 0x10e   :  { %v116_v29 = vpop.f32.mrf.mxu2 }
 0x10f   :  { %v117_v30 = vadd.f32 %v167_v28, %v116_v29 }
 0x111   :  { %v119_v31 = vmax.f32 %v117_v30, 0.0 }
 0x113   :  { %164 = vmatmul.msk.f32.vlgmr.msra.gmra.mxu3 %vm95_vm2, %v119_v31 }
 0x196   :  { %v141_v33 = vpop.f32.mrf.mxu3 }
 0x197   :  { %v142_v34 = vadd.f32 %v168_v32, %v141_v33 }
 0x199   :  { %144 = vst [vmem:[#allocation2] sm:$0xff] %v142_v34 }
 0x19a   :  { %155 = dma.vmem_to_hbm [thread:$0]  %s151_s10, 128, %s153_s13, [#allocation3]  }
 0x19b   :  { %193 = dma.done.wait [#allocation3], 128  }
 0x19c   :  { %194 = vsyncadd [#allocation3], 4294967168 }
 0x19d   :  { %160 = vsyncpa [#allocation3], 1 }

</bundles_post_ra>
